<compile_context>
chip_gen: v7x
topology: tpu7x:2x2x1
jax: 0.10.0
libtpu: 0.0.40
codegen_flags: <defaults>
</compile_context>

<pallas_src>
import numpy as np
import jax
import jax.numpy as jnp
from jax.experimental import pallas as pl
from jax.experimental.pallas import tpu as pltpu

_MARGIN = 1.0
_LANE = 128
_MAX_TB = 16 * 1024                  # cap the batch tile to bound padding waste
_VMEM_BUDGET = 8 * 1024 * 1024       # budget for in/out buffers + compute temps


def _rank_loss_kernel(x_ref, pos_ref, loss_ref):
    """One grid step: a (C, TB) tile with batch rows on the lane axis.

    pos_ref holds the *effective* positive-label mask (bf16 0/1, already zeroed
    for rows the reference loop skips), halving that input's HBM traffic.  The
    negative mask is just its complement on active rows.  Output is the per-row
    loss for this tile: lane-dense (1, TB), one disjoint block per grid step,
    so the grid axis is fully parallel (no cross-step accumulator).
    """
    sig = jax.nn.sigmoid(x_ref[...])                          # (C, TB) f32, EUP
    pos = (pos_ref[...] > 0).astype(jnp.float32)              # (C, TB) 0/1

    p_cnt = jnp.sum(pos, axis=0, keepdims=True)               # (1, TB)  P
    n_cnt = jnp.float32(x_ref.shape[0]) - p_cnt               # (1, TB)  N = C - P
    active = p_cnt > 0.0                                       # row contributes?

    sum_pos = jnp.sum(pos * sig, axis=0, keepdims=True)        # sum over positives
    sum_neg = jnp.sum(sig, axis=0, keepdims=True) - sum_pos    # sum over negatives

    # Closed-form pairwise hinge (always fires, see module docstring).
    numer = p_cnt * sum_neg - n_cnt * sum_pos + p_cnt * n_cnt * _MARGIN
    label_norm = jnp.where(active, p_cnt, 1.0)
    loss_ref[...] = jnp.where(active, numer / label_norm, 0.0)  # (1, TB)


def _prepare_masks(target):
    """JAX glue: reproduces the data-dependent row compaction of the reference."""
    t = target.astype(jnp.float32)
    b = t.shape[0]
    nz = t != 0.0
    any_nz = jnp.any(nz, axis=1)
    all_nz = jnp.all(nz, axis=1)
    mixed = jnp.logical_and(any_nz, jnp.logical_not(all_nz))   # rows the loop visits

    # The compaction of `new_target` uses the `target == 1` criterion.
    one = t == 1.0
    keep = jnp.logical_and(jnp.any(one, axis=1), jnp.logical_not(jnp.all(one, axis=1)))
    num_keep = jnp.sum(keep.astype(jnp.int32))

    # Stable sort: kept rows first, in original order -> same row order as the
    # reference's compacted `new_target`.
    keys = jnp.where(keep, jnp.arange(b), b)
    perm = jnp.argsort(keys, stable=True)
    compacted_nz = nz[perm]                                    # (b, c) bool

    # Reference quirk: row i contributes only if it is mixed AND i < num_keep,
    # and its positive labels come from compacted row i.
    active = jnp.logical_and(mixed, jnp.arange(b) < num_keep)
    pos_mask = jnp.where(active[:, None], compacted_nz, False)

    bn = jnp.sum(any_nz.astype(jnp.float32)) - jnp.sum(all_nz.astype(jnp.float32))
    bn = jnp.where(bn == 0.0, 1.0, bn)
    return pos_mask, bn


def _round_up(v, m):
    return -(-v // m) * m


@jax.jit
def rank_loss(x, target):
    x = x.astype(jnp.float32)
    pos_mask, bn = _prepare_masks(target)
    b, c = x.shape

    # Batch tile (lane axis).  With the O(C) closed form, the per-column VMEM
    # footprint is only a handful of C-length f32/bf16 vectors (double-buffered
    # inputs + temps), so take the widest tile the budget allows; cap it so the
    # worst-case batch padding stays negligible.
    per_col_bytes = 4 * (8 * c + 4)            # generous: in/out buffers + temps
    tb = (_VMEM_BUDGET // per_col_bytes) // _LANE * _LANE
    tb = max(_LANE, min(tb, _MAX_TB))
    tb = min(tb, _round_up(b, _LANE))
    b_pad = _round_up(b, tb)

    # Transpose so batch -> lanes; zero-pad the batch (padded columns have an
    # all-zero positive mask and contribute exactly 0 to the loss).  The mask
    # travels HBM->VMEM as bf16 (values 0/1 are exact) to cut its traffic in half.
    xt = jnp.pad(x.T, ((0, 0), (0, b_pad - b)))
    post = jnp.pad(pos_mask.astype(jnp.bfloat16).T, ((0, 0), (0, b_pad - b)))

    row_losses = pl.pallas_call(
        _rank_loss_kernel,
        out_shape=jax.ShapeDtypeStruct((1, b_pad), jnp.float32),
        grid=(b_pad // tb,),
        in_specs=[
            pl.BlockSpec((c, tb), lambda i: (0, i)),
            pl.BlockSpec((c, tb), lambda i: (0, i)),
        ],
        out_specs=pl.BlockSpec((1, tb), lambda i: (0, i)),
        compiler_params=pltpu.CompilerParams(
            dimension_semantics=("parallel",),
            vmem_limit_bytes=32 * 1024 * 1024,
        ),
    )(xt, post)

    # Final reduction and batch normalization in plain JAX (keeps the grid axis
    # truly parallel — both v7x TensorCores can split the batch).
    return (jnp.sum(row_losses) / bn).reshape(1)


def _rank_loss_reference(x, t):
    """Pure-numpy reimplementation of the PyTorch loop (effective semantics)."""
    margin = 1.0
    x = np.asarray(x, dtype=np.float64)
    t = np.asarray(t, dtype=np.float64)
    b, c = x.shape
    sig = 1.0 / (1.0 + np.exp(-x))
    any_pos = np.any(t, axis=1)
    all_pos = np.all(t, axis=1)
    bn = float(any_pos.sum() - all_pos.sum())
    if bn == 0:
        bn = 1.0
    pos_ind = np.zeros((b, c))
    neg_ind = np.zeros((b, c))
    big_l = np.zeros(b)
    new_target = t[np.any(t == 1, axis=1)]
    backup = new_target.copy()
    new_target = new_target[~np.all(backup == 1, axis=1)]
    j_pairs = np.argwhere(new_target != 0)
    mixed_rows = np.setdiff1d(np.where(np.any(t, axis=1))[0],
                              np.where(np.all(t, axis=1))[0])
    all_idx = np.arange(c)
    for i in mixed_rows:
        pos_labels = []
        msk = np.ones(c, dtype=bool)
        for r, j in j_pairs:
            if r == i:
                pos_labels.append(j)
                msk[j] = False
        if pos_labels:
            for p in pos_labels:
                neg_list = list(all_idx[msk])
                if neg_list:
                    for n in neg_list:
                        m = sig[i, n] - sig[i, p] + margin
                        if m < 0:
                            continue
                        neg_ind[i, n] += 1
                        pos_ind[i, p] += 1
                        big_l[i] += margin
    label_norm = (pos_ind != 0).sum(axis=1).astype(np.float64)
    label_norm[label_norm == 0] = 1.0
    loss = (-(pos_ind * sig).sum(1) + (neg_ind * sig).sum(1) + big_l) / label_norm
    return np.array([loss.sum() / bn], dtype=np.float32)


if __name__ == "__main__":
    key = jax.random.PRNGKey(0)
    kx, kt = jax.random.split(key)
    B, C = 8, 16
    x = jax.random.normal(kx, (B, C), dtype=jnp.float32)
    target = (jax.random.uniform(kt, (B, C)) < 0.5).astype(jnp.float32)
    # exercise edge cases: one all-negative row, one all-positive row
    target = target.at[0].set(0.0)
    target = target.at[1].set(1.0)

    out = jax.block_until_ready(rank_loss(x, target))

    ref = _rank_loss_reference(np.asarray(x), np.asarray(target))
    np.testing.assert_allclose(np.asarray(out), ref, rtol=1e-5, atol=1e-5)
    print("KERNEL_OK")
</pallas_src>

<mosaic_0001>
module attributes {stable_mosaic.version = 11 : i64} {
  func.func @_rank_loss_kernel(%arg0: i32, %arg1: memref<16x128xf32, #tpu.memory_space<vmem>>, %arg2: memref<16x128xbf16, #tpu.memory_space<vmem>>, %arg3: memref<1x128xf32, #tpu.memory_space<vmem>>) attributes {dimension_semantics = [#tpu.dimension_semantics<parallel>], iteration_bounds = array<i64: 1>, scalar_prefetch = 0 : i64, scratch_operands = 0 : i64, tpu.core_type = #tpu.core_type<tc>, window_params = [{transform_indices = @transform_0, window_bounds = array<i64: 16, 128>}, {transform_indices = @transform_1, window_bounds = array<i64: 16, 128>}, {transform_indices = @transform_2, window_bounds = array<i64: 1, 128>}]} {
    %c0 = arith.constant 0 : index
    %c0_0 = arith.constant 0 : index
    %0 = vector.load %arg1[%c0, %c0_0] : memref<16x128xf32, #tpu.memory_space<vmem>>, vector<16x128xf32>
    %1 = arith.negf %0 : vector<16x128xf32>
    %2 = math.exp %1 : vector<16x128xf32>
    %cst = arith.constant 1.000000e+00 : f32
    %3 = vector.broadcast %cst : f32 to vector<16x128xf32>
    %4 = arith.addf %3, %2 : vector<16x128xf32>
    %5 = arith.divf %3, %4 : vector<16x128xf32>
    %c0_1 = arith.constant 0 : index
    %c0_2 = arith.constant 0 : index
    %6 = vector.load %arg2[%c0_1, %c0_2] : memref<16x128xbf16, #tpu.memory_space<vmem>>, vector<16x128xbf16>
    %cst_3 = arith.constant 0.000000e+00 : bf16
    %7 = vector.broadcast %cst_3 : bf16 to vector<16x128xbf16>
    %8 = arith.cmpf ogt, %6, %7 : vector<16x128xbf16>
    %9 = arith.extui %8 : vector<16x128xi1> to vector<16x128xi32>
    %10 = arith.sitofp %9 : vector<16x128xi32> to vector<16x128xf32>
    %cst_4 = arith.constant dense<0.000000e+00> : vector<128xf32>
    %11 = vector.multi_reduction <add>, %10, %cst_4 [0] : vector<16x128xf32> to vector<128xf32>
    %12 = vector.shape_cast %11 : vector<128xf32> to vector<1x128xf32>
    %cst_5 = arith.constant 1.600000e+01 : f32
    %13 = vector.broadcast %cst_5 : f32 to vector<1x128xf32>
    %14 = arith.subf %13, %12 : vector<1x128xf32>
    %cst_6 = arith.constant 0.000000e+00 : f32
    %15 = vector.broadcast %cst_6 : f32 to vector<1x128xf32>
    %16 = arith.cmpf ogt, %12, %15 : vector<1x128xf32>
    %17 = arith.mulf %10, %5 : vector<16x128xf32>
    %cst_7 = arith.constant dense<0.000000e+00> : vector<128xf32>
    %18 = vector.multi_reduction <add>, %17, %cst_7 [0] : vector<16x128xf32> to vector<128xf32>
    %19 = vector.shape_cast %18 : vector<128xf32> to vector<1x128xf32>
    %cst_8 = arith.constant dense<0.000000e+00> : vector<128xf32>
    %20 = vector.multi_reduction <add>, %5, %cst_8 [0] : vector<16x128xf32> to vector<128xf32>
    %21 = vector.shape_cast %20 : vector<128xf32> to vector<1x128xf32>
    %22 = arith.subf %21, %19 : vector<1x128xf32>
    %23 = arith.mulf %12, %22 : vector<1x128xf32>
    %24 = arith.mulf %14, %19 : vector<1x128xf32>
    %25 = arith.subf %23, %24 : vector<1x128xf32>
    %26 = arith.mulf %12, %14 : vector<1x128xf32>
    %cst_9 = arith.constant 1.000000e+00 : f32
    %27 = vector.broadcast %cst_9 : f32 to vector<1x128xf32>
    %28 = arith.mulf %26, %27 : vector<1x128xf32>
    %29 = arith.addf %25, %28 : vector<1x128xf32>
    %cst_10 = arith.constant 1.000000e+00 : f32
    %30 = vector.broadcast %cst_10 : f32 to vector<1x128xf32>
    %31 = arith.select %16, %12, %30 : vector<1x128xi1>, vector<1x128xf32>
    %32 = arith.divf %29, %31 : vector<1x128xf32>
    %cst_11 = arith.constant 0.000000e+00 : f32
    %33 = vector.broadcast %cst_11 : f32 to vector<1x128xf32>
    %34 = arith.select %16, %32, %33 : vector<1x128xi1>, vector<1x128xf32>
    %c0_12 = arith.constant 0 : index
    %c0_13 = arith.constant 0 : index
    %35 = vector.load %arg3[%c0_12, %c0_13] : memref<1x128xf32, #tpu.memory_space<vmem>>, vector<1x128xf32>
    tpu.vector_store %arg3[%c0_12, %c0_13], %34 {strides = array<i32>} : memref<1x128xf32, #tpu.memory_space<vmem>>, vector<1x128xf32>,
    return
  }
  func.func @transform_0(%arg0: i32) -> (i32, i32) {
    %c0_i32 = arith.constant 0 : i32
    %c0_i32_0 = arith.constant 0 : i32
    return %c0_i32, %arg0 : i32, i32
  }
  func.func @transform_1(%arg0: i32) -> (i32, i32) {
    %c0_i32 = arith.constant 0 : i32
    %c0_i32_0 = arith.constant 0 : i32
    return %c0_i32, %arg0 : i32, i32
  }
  func.func @transform_2(%arg0: i32) -> (i32, i32) {
    %c0_i32 = arith.constant 0 : i32
    %c0_i32_0 = arith.constant 0 : i32
    return %c0_i32, %arg0 : i32, i32
  }
}

</mosaic_0001>

<bundles_post_ra>
// kernel: rank_loss.1
= control target key start
LH: loop header
LB: loop body
LE: loop exit
PB: predicated region body
PF: predicated region fallthrough
CT: control target
= control target key end

     0   :  { %v98_v6 = vmov 0   ;;  %v99_v11 = vmov 0.0   ;;  %s132_s0 = inlined_call_operand.vmem [shape: f32[16,128], index: 0, kind: input, shape index: {}]   ;;  %s133_s1 = inlined_call_operand.vmem [shape: bf16[16,128], index: 1, kind: input, shape index: {}]   ;;  %s134_s2 = inlined_call_operand.vmem [shape: f32[1,128], index: 2, kind: output, shape index: {}]  }
   0x1   :  { %v14_v0 = vld [vmem:[%s132_s0] sm:$0xff]  ;;  %v15_v1 = vld [vmem:[%s132_s0 + $0x8] sm:$0xff] }
   0x2   :  { %v28_v2 = vld [vmem:[%s133_s1] sm:$0xf]  ;;  %v82_v3 = vmul.f32 -1.442695, %v14_v0  ;;  %v83_v4 = vmul.f32 -1.442695, %v15_v1 }
   0x3   :  { %v29_v5 = vld [vmem:[%s133_s1 + $0x4] sm:$0xf]  ;;  %vm30_vm0 = vcmp.gt.bf16.partialorder %v28_v2, 0 }
   0x4   :  { %vm31_vm1 = vcmp.gt.bf16.partialorder %v29_v5, 0  ;;  %88 = vpow2.f32 %v82_v3  ;;  %v32_v7 = vsel %vm30_vm0, 65537, %v98_v6 }
   0x5   :  { %v33_v8 = vsel %vm31_vm1, 65537, %v98_v6  ;;  %90 = vpow2.f32 %v83_v4  ;;  %v34_v9 = vunpack.c.l.b16 %v32_v7 }
   0x6   :  { %v35_v10 = vunpack.c.l.b16 %v33_v8 }
   0x7   :  { %vm36_vm2 = vcmp.ne.s32.totalorder %v34_v9, 0 }
   0x8   :  { %vm37_vm3 = vcmp.ne.s32.totalorder %v35_v10, 0  ;;  %v84_v12 = vsel %vm36_vm2, 1.0, %v99_v11 }
   0x9   :  { %v85_v13 = vsel %vm37_vm3, 1.0, %v99_v11 }
   0xa   :  { %v42_v14 = vadd.f32 %v85_v13, %v84_v12 }
   0xc   :  { %v43_v15 = vrot.slane %v42_v14, 4 }
   0xe   :  { %v89_v16 = vpop.eup %88  ;;  %v44_v17 = vadd.f32 %v43_v15, %v42_v14 }
   0xf   :  { %v91_v18 = vpop.eup %90  ;;  %v22_v19 = vadd.f32 1.0, %v89_v16 }
  0x10   :  { %v23_v20 = vadd.f32 1.0, %v91_v18  ;;  %v45_v21 = vrot.slane %v44_v17, 2 }
  0x11   :  { %92 = vrcp.f32 %v22_v19 }
  0x12   :  { %94 = vrcp.f32 %v23_v20  ;;  %v46_v22 = vadd.f32 %v45_v21, %v44_v17 }
  0x14   :  { %v47_v23 = vrot.slane %v46_v22, 1 }
  0x16   :  { %v48_v29 = vadd.f32 %v47_v23, %v46_v22 }
  0x18   :  { %vm50_vm4 = vcmp.gt.f32.partialorder %v48_v29, 0.0  ;;  %v49_v41 = vsub.f32 16.0, %v48_v29 }
  0x19   :  { %v73_v38 = vsel %vm50_vm4, %v48_v29, 1.0 }
  0x1a   :  { %96 = vrcp.f32 %v73_v38  ;;  %v71_v48 = vmul.f32 %v49_v41, %v48_v29 }
  0x1b   :  { %v93_v24 = vpop.eup %92 }
  0x1c   :  { %v95_v25 = vpop.eup %94  ;;  %v51_v26 = vmul.f32 %v93_v24, %v84_v12 }
  0x1d   :  { %v52_v27 = vmul.f32 %v95_v25, %v85_v13  ;;  %v60_v28 = vadd.f32 %v95_v25, %v93_v24 }
  0x1f   :  { %v53_v30 = vadd.f32 %v52_v27, %v51_v26  ;;  %v61_v31 = vrot.slane %v60_v28, 4 }
  0x21   :  { %v54_v32 = vrot.slane %v53_v30, 4  ;;  %v62_v33 = vadd.f32 %v61_v31, %v60_v28 }
  0x23   :  { %v55_v34 = vadd.f32 %v54_v32, %v53_v30  ;;  %v63_v35 = vrot.slane %v62_v33, 2 }
  0x24   :  { %v97_v50 = vpop.eup %96 }
  0x25   :  { %v56_v36 = vrot.slane %v55_v34, 2  ;;  %v64_v37 = vadd.f32 %v63_v35, %v62_v33 }
  0x27   :  { %v57_v39 = vadd.f32 %v56_v36, %v55_v34  ;;  %v65_v40 = vrot.slane %v64_v37, 1 }
  0x29   :  { %v58_v42 = vrot.slane %v57_v39, 1  ;;  %v66_v43 = vadd.f32 %v65_v40, %v64_v37 }
  0x2b   :  { %v59_v44 = vadd.f32 %v58_v42, %v57_v39 }
  0x2d   :  { %v67_v45 = vsub.f32 %v66_v43, %v59_v44  ;;  %v69_v46 = vmul.f32 %v59_v44, %v49_v41 }
  0x2f   :  { %v68_v47 = vmul.f32 %v67_v45, %v48_v29 }
  0x31   :  { %v70_v49 = vsub.f32 %v68_v47, %v69_v46 }
  0x33   :  { %v72_v51 = vadd.f32 %v71_v48, %v70_v49 }
  0x35   :  { %v75_v52 = vmul.f32 %v97_v50, %v72_v51 }
  0x37   :  { %v76_v53 = vsel %vm50_vm4, %v75_v52, 0.0 }
  0x38   :  { %77 = vst [vmem:[%s134_s2] sm:$0x1] %v76_v53 }

</bundles_post_ra>
